<compile_context>
chip_gen: v7x
topology: tpu7x:2x2x1
jax: 0.10.0
libtpu: 0.0.40
codegen_flags: <defaults>
</compile_context>

<pallas_src>
import math
import functools

import jax
import jax.numpy as jnp
from jax import lax
from jax.experimental import pallas as pl
from jax.experimental.pallas import tpu as pltpu

# Large finite negative for masking (avoids inf arithmetic / NaNs on fully masked rows).
_MASK_VALUE = -0.7 * float(jnp.finfo(jnp.float32).max)


# ---------------------------------------------------------------------------
# Fused kernel: QKV projection + causal attention + output projection,
# one batch element per grid step.
# ---------------------------------------------------------------------------
def _fused_csa_kernel(xq_ref, xk_ref, xv_ref,
                      wq_ref, bq_ref, wk_ref, bk_ref, wv_ref, bv_ref,
                      wo_ref, bo_ref, o_ref,
                      *, nb_heads, d_k, d_v, scale):
    f32 = jnp.float32
    bf16 = jnp.bfloat16

    # ---- Q/K/V projections: lane-dense (S, H*d) outputs, bf16 MXU, f32 accumulate ----
    xq = xq_ref[...].astype(bf16)
    xk = xk_ref[...].astype(bf16)
    xv = xv_ref[...].astype(bf16)
    q = jnp.dot(xq, wq_ref[...], preferred_element_type=f32) + bq_ref[...]
    k = jnp.dot(xk, wk_ref[...], preferred_element_type=f32) + bk_ref[...]
    v = jnp.dot(xv, wv_ref[...], preferred_element_type=f32) + bv_ref[...]

    # Apply 1/sqrt(d_k) once to Q (S*H*d_k elements) instead of the SxS scores,
    # and cast Q/K/V to bf16 a single time (per-head slices reuse the cast values).
    q = (q * scale).astype(bf16)
    k = k.astype(bf16)
    v = v.astype(bf16)

    S = q.shape[0]
    row = lax.broadcasted_iota(jnp.int32, (S, S), 0)
    col = lax.broadcasted_iota(jnp.int32, (S, S), 1)
    causal = col <= row

    out_acc = jnp.zeros(o_ref.shape, f32)  # (S, d_model) f32 accumulator

    # Heads are few and static -> unrolled Python loop; everything stays on-chip.
    for h in range(nb_heads):
        qh = q[:, h * d_k:(h + 1) * d_k]
        kh = k[:, h * d_k:(h + 1) * d_k]
        vh = v[:, h * d_v:(h + 1) * d_v]

        # QK^T: contract last dims directly (no explicit transpose).
        s = lax.dot_general(qh, kh, (((1,), (1,)), ((), ())),
                            preferred_element_type=f32)
        s = jnp.where(causal, s, _MASK_VALUE)

        # Numerically stable softmax in f32; normalize via approx reciprocal (EUP).
        m = jnp.max(s, axis=-1, keepdims=True)
        p = jnp.exp(s - m)
        l = jnp.sum(p, axis=-1, keepdims=True)
        p = p * pl.reciprocal(l, approx=True)

        # Context for this head, then fold the head-merge into the output projection
        # (wo sliced along the sublane dim at 8-aligned offsets -> aligned access).
        ctx = jnp.dot(p.astype(bf16), vh, preferred_element_type=f32)        # (S, d_v)
        out_acc = out_acc + jnp.dot(ctx.astype(bf16),
                                    wo_ref[h * d_v:(h + 1) * d_v, :],
                                    preferred_element_type=f32)              # (S, d_model)

    o_ref[...] = out_acc + bo_ref[...]


# ---------------------------------------------------------------------------
# Module-equivalent forward (pad_mask=None)
# ---------------------------------------------------------------------------
def causal_self_attention_forward(params, q_in, k_in, v_in, *, nb_heads, d_k, d_v):
    """Equivalent of CausalSelfAttention.forward (pad_mask=None).

    q_in/k_in/v_in: (B, S, d_model) float32.  Returns (B, S, d_model) float32.
    """
    B, S, d_model = q_in.shape
    bf16 = jnp.bfloat16
    f32 = jnp.float32

    # Weights in bf16 (halves weight DMA; MXU runs bf16 natively with f32 accumulate).
    wq = params["wq"].astype(bf16)
    wk = params["wk"].astype(bf16)
    wv = params["wv"].astype(bf16)
    wo = params["wo"].astype(bf16)
    # Biases stay f32, shaped (1, N) for lane layout.
    bq = params["bq"].reshape(1, -1).astype(f32)
    bk = params["bk"].reshape(1, -1).astype(f32)
    bv = params["bv"].reshape(1, -1).astype(f32)
    bo = params["bo"].reshape(1, -1).astype(f32)

    kernel = functools.partial(
        _fused_csa_kernel, nb_heads=nb_heads, d_k=d_k, d_v=d_v,
        scale=1.0 / math.sqrt(d_k))

    act_spec = pl.BlockSpec((None, S, d_model), lambda b: (b, 0, 0))

    def full2d(arr):
        # Whole (small) weight/bias array resident in VMEM, same block every step.
        return pl.BlockSpec(arr.shape, lambda b: (0, 0))

    return pl.pallas_call(
        kernel,
        out_shape=jax.ShapeDtypeStruct((B, S, d_model), f32),
        grid=(B,),
        in_specs=[
            act_spec, act_spec, act_spec,
            full2d(wq), full2d(bq),
            full2d(wk), full2d(bk),
            full2d(wv), full2d(bv),
            full2d(wo), full2d(bo),
        ],
        out_specs=pl.BlockSpec((None, S, d_model), lambda b: (b, 0, 0)),
        compiler_params=pltpu.CompilerParams(
            dimension_semantics=("parallel",)),
    )(q_in, k_in, v_in, wq, bq, wk, bk, wv, bv, wo, bo)


# ---------------------------------------------------------------------------
# Pure-JAX f32 reference (mirrors the PyTorch forward) for a sanity check
# ---------------------------------------------------------------------------
def reference_forward(params, q_in, k_in, v_in, *, nb_heads, d_k, d_v):
    B, S, d_model = q_in.shape
    q = q_in @ params["wq"] + params["bq"]
    k = k_in @ params["wk"] + params["bk"]
    v = v_in @ params["wv"] + params["bv"]
    q = q.reshape(B, S, nb_heads, d_k).transpose(0, 2, 1, 3)
    k = k.reshape(B, S, nb_heads, d_k).transpose(0, 2, 1, 3)
    v = v.reshape(B, S, nb_heads, d_v).transpose(0, 2, 1, 3)
    att = jnp.einsum("bhqd,bhkd->bhqk", q, k) / math.sqrt(d_k)
    mask = jnp.tril(jnp.ones((S, S)))
    att = jnp.where(mask[None, None] == 0, -jnp.inf, att)
    att = jax.nn.softmax(att, axis=-1)
    ctx = jnp.einsum("bhqk,bhkd->bhqd", att, v)
    ctx = ctx.transpose(0, 2, 1, 3).reshape(B, S, nb_heads * d_v)
    return ctx @ params["wo"] + params["bo"]


# ---------------------------------------------------------------------------
# Main
# ---------------------------------------------------------------------------
if __name__ == "__main__":
    # Small, module-consistent shapes.
    B, S = 2, 8            # batch, sequence length (<= max_len)
    d_model = 32
    nb_heads = 4
    d_k = d_v = 8

    key = jax.random.PRNGKey(0)
    keys = jax.random.split(key, 12)

    def init_w(k, shape, fan_in):
        bound = 1.0 / math.sqrt(fan_in)
        return jax.random.uniform(k, shape, jnp.float32, -bound, bound)

    # nn.Linear(d_model, out) == x @ W + b with W stored directly as (in, out).
    params = {
        "wq": init_w(keys[0], (d_model, d_k * nb_heads), d_model),
        "bq": init_w(keys[1], (d_k * nb_heads,), d_model),
        "wk": init_w(keys[2], (d_model, d_k * nb_heads), d_model),
        "bk": init_w(keys[3], (d_k * nb_heads,), d_model),
        "wv": init_w(keys[4], (d_model, d_v * nb_heads), d_model),
        "bv": init_w(keys[5], (d_v * nb_heads,), d_model),
        "wo": init_w(keys[6], (d_v * nb_heads, d_model), d_v * nb_heads),
        "bo": init_w(keys[7], (d_model,), d_v * nb_heads),
    }

    q_in = jax.random.normal(keys[8], (B, S, d_model), jnp.float32)
    k_in = jax.random.normal(keys[9], (B, S, d_model), jnp.float32)
    v_in = jax.random.normal(keys[10], (B, S, d_model), jnp.float32)

    out = causal_self_attention_forward(
        params, q_in, k_in, v_in, nb_heads=nb_heads, d_k=d_k, d_v=d_v
    )
    out = jax.block_until_ready(out)

    ref = reference_forward(
        params, q_in, k_in, v_in, nb_heads=nb_heads, d_k=d_k, d_v=d_v
    )
    assert out.shape == (B, S, d_model)
    # Loose tolerance: kernel runs the MXU matmuls in bf16 (f32 accumulate) and the
    # softmax normalize via approx reciprocal; reference is full f32.
    assert jnp.allclose(out, ref, atol=1e-1, rtol=1e-1), "mismatch vs reference"

    print("KERNEL_OK")
</pallas_src>

<mosaic_0001>
module attributes {stable_mosaic.version = 11 : i64} {
  func.func @_fused_csa_kernel(%arg0: i32, %arg1: memref<1x8x32xf32, #tpu.memory_space<vmem>>, %arg2: memref<1x8x32xf32, #tpu.memory_space<vmem>>, %arg3: memref<1x8x32xf32, #tpu.memory_space<vmem>>, %arg4: memref<32x32xbf16, #tpu.memory_space<vmem>>, %arg5: memref<1x32xf32, #tpu.memory_space<vmem>>, %arg6: memref<32x32xbf16, #tpu.memory_space<vmem>>, %arg7: memref<1x32xf32, #tpu.memory_space<vmem>>, %arg8: memref<32x32xbf16, #tpu.memory_space<vmem>>, %arg9: memref<1x32xf32, #tpu.memory_space<vmem>>, %arg10: memref<32x32xbf16, #tpu.memory_space<vmem>>, %arg11: memref<1x32xf32, #tpu.memory_space<vmem>>, %arg12: memref<1x8x32xf32, #tpu.memory_space<vmem>>) attributes {dimension_semantics = [#tpu.dimension_semantics<parallel>], iteration_bounds = array<i64: 2>, scalar_prefetch = 0 : i64, scratch_operands = 0 : i64, tpu.core_type = #tpu.core_type<tc>, window_params = [{transform_indices = @transform_0, window_bounds = array<i64: 1, 8, 32>}, {transform_indices = @transform_1, window_bounds = array<i64: 1, 8, 32>}, {transform_indices = @transform_2, window_bounds = array<i64: 1, 8, 32>}, {pipeline_mode = #tpu.pipeline_mode<synchronous>, transform_indices = @transform_3, window_bounds = array<i64: 32, 32>}, {pipeline_mode = #tpu.pipeline_mode<synchronous>, transform_indices = @transform_4, window_bounds = array<i64: 1, 32>}, {pipeline_mode = #tpu.pipeline_mode<synchronous>, transform_indices = @transform_5, window_bounds = array<i64: 32, 32>}, {pipeline_mode = #tpu.pipeline_mode<synchronous>, transform_indices = @transform_6, window_bounds = array<i64: 1, 32>}, {pipeline_mode = #tpu.pipeline_mode<synchronous>, transform_indices = @transform_7, window_bounds = array<i64: 32, 32>}, {pipeline_mode = #tpu.pipeline_mode<synchronous>, transform_indices = @transform_8, window_bounds = array<i64: 1, 32>}, {pipeline_mode = #tpu.pipeline_mode<synchronous>, transform_indices = @transform_9, window_bounds = array<i64: 32, 32>}, {pipeline_mode = #tpu.pipeline_mode<synchronous>, transform_indices = @transform_10, window_bounds = array<i64: 1, 32>}, {transform_indices = @transform_11, window_bounds = array<i64: 1, 8, 32>}]} {
    %c0 = arith.constant 0 : index
    %c0_0 = arith.constant 0 : index
    %c0_1 = arith.constant 0 : index
    %0 = vector.load %arg1[%c0, %c0_0, %c0_1] : memref<1x8x32xf32, #tpu.memory_space<vmem>>, vector<1x8x32xf32>
    %1 = vector.shape_cast %0 : vector<1x8x32xf32> to vector<8x32xf32>
    %2 = arith.truncf %1 : vector<8x32xf32> to vector<8x32xbf16>
    %c0_2 = arith.constant 0 : index
    %c0_3 = arith.constant 0 : index
    %c0_4 = arith.constant 0 : index
    %3 = vector.load %arg2[%c0_2, %c0_3, %c0_4] : memref<1x8x32xf32, #tpu.memory_space<vmem>>, vector<1x8x32xf32>
    %4 = vector.shape_cast %3 : vector<1x8x32xf32> to vector<8x32xf32>
    %5 = arith.truncf %4 : vector<8x32xf32> to vector<8x32xbf16>
    %c0_5 = arith.constant 0 : index
    %c0_6 = arith.constant 0 : index
    %c0_7 = arith.constant 0 : index
    %6 = vector.load %arg3[%c0_5, %c0_6, %c0_7] : memref<1x8x32xf32, #tpu.memory_space<vmem>>, vector<1x8x32xf32>
    %7 = vector.shape_cast %6 : vector<1x8x32xf32> to vector<8x32xf32>
    %8 = arith.truncf %7 : vector<8x32xf32> to vector<8x32xbf16>
    %c0_8 = arith.constant 0 : index
    %c0_9 = arith.constant 0 : index
    %9 = vector.load %arg4[%c0_8, %c0_9] : memref<32x32xbf16, #tpu.memory_space<vmem>>, vector<32x32xbf16>
    %cst = arith.constant dense<0.000000e+00> : vector<8x32xf32>
    %10 = tpu.matmul %2, %9, %cst {dimension_numbers = #tpu.dot_dimension_numbers<[1], [0], [0], [1], [0, 0, 1, 1], [], []>} : vector<8x32xbf16>, vector<32x32xbf16>, vector<8x32xf32> -> vector<8x32xf32>
    %c0_10 = arith.constant 0 : index
    %c0_11 = arith.constant 0 : index
    %11 = vector.load %arg5[%c0_10, %c0_11] : memref<1x32xf32, #tpu.memory_space<vmem>>, vector<1x32xf32>
    %12 = vector.broadcast %11 : vector<1x32xf32> to vector<8x32xf32>
    %13 = arith.addf %10, %12 : vector<8x32xf32>
    %c0_12 = arith.constant 0 : index
    %c0_13 = arith.constant 0 : index
    %14 = vector.load %arg6[%c0_12, %c0_13] : memref<32x32xbf16, #tpu.memory_space<vmem>>, vector<32x32xbf16>
    %cst_14 = arith.constant dense<0.000000e+00> : vector<8x32xf32>
    %15 = tpu.matmul %5, %14, %cst_14 {dimension_numbers = #tpu.dot_dimension_numbers<[1], [0], [0], [1], [0, 0, 1, 1], [], []>} : vector<8x32xbf16>, vector<32x32xbf16>, vector<8x32xf32> -> vector<8x32xf32>
    %c0_15 = arith.constant 0 : index
    %c0_16 = arith.constant 0 : index
    %16 = vector.load %arg7[%c0_15, %c0_16] : memref<1x32xf32, #tpu.memory_space<vmem>>, vector<1x32xf32>
    %17 = vector.broadcast %16 : vector<1x32xf32> to vector<8x32xf32>
    %18 = arith.addf %15, %17 : vector<8x32xf32>
    %c0_17 = arith.constant 0 : index
    %c0_18 = arith.constant 0 : index
    %19 = vector.load %arg8[%c0_17, %c0_18] : memref<32x32xbf16, #tpu.memory_space<vmem>>, vector<32x32xbf16>
    %cst_19 = arith.constant dense<0.000000e+00> : vector<8x32xf32>
    %20 = tpu.matmul %8, %19, %cst_19 {dimension_numbers = #tpu.dot_dimension_numbers<[1], [0], [0], [1], [0, 0, 1, 1], [], []>} : vector<8x32xbf16>, vector<32x32xbf16>, vector<8x32xf32> -> vector<8x32xf32>
    %c0_20 = arith.constant 0 : index
    %c0_21 = arith.constant 0 : index
    %21 = vector.load %arg9[%c0_20, %c0_21] : memref<1x32xf32, #tpu.memory_space<vmem>>, vector<1x32xf32>
    %22 = vector.broadcast %21 : vector<1x32xf32> to vector<8x32xf32>
    %23 = arith.addf %20, %22 : vector<8x32xf32>
    %cst_22 = arith.constant 0.353553385 : f32
    %24 = vector.broadcast %cst_22 : f32 to vector<8x32xf32>
    %25 = arith.mulf %13, %24 : vector<8x32xf32>
    %26 = arith.truncf %25 : vector<8x32xf32> to vector<8x32xbf16>
    %27 = arith.truncf %18 : vector<8x32xf32> to vector<8x32xbf16>
    %28 = arith.truncf %23 : vector<8x32xf32> to vector<8x32xbf16>
    %29 = tpu.iota {dimensions = array<i32: 0>} : vector<8x8xi32>
    %30 = tpu.iota {dimensions = array<i32: 1>} : vector<8x8xi32>
    %31 = arith.cmpi sle, %30, %29 : vector<8x8xi32>
    %cst_23 = arith.constant 0.000000e+00 : f32
    %32 = vector.broadcast %cst_23 : f32 to vector<8x32xf32>
    %33 = vector.extract_strided_slice %26 {offsets = [0, 0], sizes = [8, 8], strides = [1, 1]} : vector<8x32xbf16> to vector<8x8xbf16>
    %34 = vector.extract_strided_slice %27 {offsets = [0, 0], sizes = [8, 8], strides = [1, 1]} : vector<8x32xbf16> to vector<8x8xbf16>
    %35 = vector.extract_strided_slice %28 {offsets = [0, 0], sizes = [8, 8], strides = [1, 1]} : vector<8x32xbf16> to vector<8x8xbf16>
    %cst_24 = arith.constant dense<0.000000e+00> : vector<8x8xf32>
    %36 = tpu.matmul %33, %34, %cst_24 {dimension_numbers = #tpu.dot_dimension_numbers<[1], [1], [0], [0], [0, 0, 1, 0], [], []>} : vector<8x8xbf16>, vector<8x8xbf16>, vector<8x8xf32> -> vector<8x8xf32>
    %cst_25 = arith.constant -2.38197633E+38 : f32
    %37 = vector.broadcast %cst_25 : f32 to vector<8x8xf32>
    %38 = arith.select %31, %36, %37 : vector<8x8xi1>, vector<8x8xf32>
    %cst_26 = arith.constant dense<0xFF800000> : vector<8xf32>
    %39 = vector.multi_reduction <maximumf>, %38, %cst_26 [1] : vector<8x8xf32> to vector<8xf32>
    %40 = vector.shape_cast %39 : vector<8xf32> to vector<8x1xf32>
    %41 = vector.broadcast %40 : vector<8x1xf32> to vector<8x8xf32>
    %42 = arith.subf %38, %41 : vector<8x8xf32>
    %43 = math.exp %42 : vector<8x8xf32>
    %cst_27 = arith.constant dense<0.000000e+00> : vector<8xf32>
    %44 = vector.multi_reduction <add>, %43, %cst_27 [1] : vector<8x8xf32> to vector<8xf32>
    %45 = vector.shape_cast %44 : vector<8xf32> to vector<8x1xf32>
    %46 = tpu.reciprocal %45 {approx = true} : vector<8x1xf32> -> vector<8x1xf32>
    %47 = vector.broadcast %46 : vector<8x1xf32> to vector<8x8xf32>
    %48 = arith.mulf %43, %47 : vector<8x8xf32>
    %49 = arith.truncf %48 : vector<8x8xf32> to vector<8x8xbf16>
    %cst_28 = arith.constant dense<0.000000e+00> : vector<8x8xf32>
    %50 = tpu.matmul %49, %35, %cst_28 {dimension_numbers = #tpu.dot_dimension_numbers<[1], [0], [0], [1], [0, 0, 1, 1], [], []>} : vector<8x8xbf16>, vector<8x8xbf16>, vector<8x8xf32> -> vector<8x8xf32>
    %51 = arith.truncf %50 : vector<8x8xf32> to vector<8x8xbf16>
    %c0_29 = arith.constant 0 : index
    %c0_30 = arith.constant 0 : index
    %52 = vector.load %arg10[%c0_29, %c0_30] : memref<32x32xbf16, #tpu.memory_space<vmem>>, vector<8x32xbf16>
    %cst_31 = arith.constant dense<0.000000e+00> : vector<8x32xf32>
    %53 = tpu.matmul %51, %52, %cst_31 {dimension_numbers = #tpu.dot_dimension_numbers<[1], [0], [0], [1], [0, 0, 1, 1], [], []>} : vector<8x8xbf16>, vector<8x32xbf16>, vector<8x32xf32> -> vector<8x32xf32>
    %54 = arith.addf %32, %53 : vector<8x32xf32>
    %55 = vector.extract_strided_slice %26 {offsets = [0, 8], sizes = [8, 8], strides = [1, 1]} : vector<8x32xbf16> to vector<8x8xbf16>
    %56 = vector.extract_strided_slice %27 {offsets = [0, 8], sizes = [8, 8], strides = [1, 1]} : vector<8x32xbf16> to vector<8x8xbf16>
    %57 = vector.extract_strided_slice %28 {offsets = [0, 8], sizes = [8, 8], strides = [1, 1]} : vector<8x32xbf16> to vector<8x8xbf16>
    %cst_32 = arith.constant dense<0.000000e+00> : vector<8x8xf32>
    %58 = tpu.matmul %55, %56, %cst_32 {dimension_numbers = #tpu.dot_dimension_numbers<[1], [1], [0], [0], [0, 0, 1, 0], [], []>} : vector<8x8xbf16>, vector<8x8xbf16>, vector<8x8xf32> -> vector<8x8xf32>
    %cst_33 = arith.constant -2.38197633E+38 : f32
    %59 = vector.broadcast %cst_33 : f32 to vector<8x8xf32>
    %60 = arith.select %31, %58, %59 : vector<8x8xi1>, vector<8x8xf32>
    %cst_34 = arith.constant dense<0xFF800000> : vector<8xf32>
    %61 = vector.multi_reduction <maximumf>, %60, %cst_34 [1] : vector<8x8xf32> to vector<8xf32>
    %62 = vector.shape_cast %61 : vector<8xf32> to vector<8x1xf32>
    %63 = vector.broadcast %62 : vector<8x1xf32> to vector<8x8xf32>
    %64 = arith.subf %60, %63 : vector<8x8xf32>
    %65 = math.exp %64 : vector<8x8xf32>
    %cst_35 = arith.constant dense<0.000000e+00> : vector<8xf32>
    %66 = vector.multi_reduction <add>, %65, %cst_35 [1] : vector<8x8xf32> to vector<8xf32>
    %67 = vector.shape_cast %66 : vector<8xf32> to vector<8x1xf32>
    %68 = tpu.reciprocal %67 {approx = true} : vector<8x1xf32> -> vector<8x1xf32>
    %69 = vector.broadcast %68 : vector<8x1xf32> to vector<8x8xf32>
    %70 = arith.mulf %65, %69 : vector<8x8xf32>
    %71 = arith.truncf %70 : vector<8x8xf32> to vector<8x8xbf16>
    %cst_36 = arith.constant dense<0.000000e+00> : vector<8x8xf32>
    %72 = tpu.matmul %71, %57, %cst_36 {dimension_numbers = #tpu.dot_dimension_numbers<[1], [0], [0], [1], [0, 0, 1, 1], [], []>} : vector<8x8xbf16>, vector<8x8xbf16>, vector<8x8xf32> -> vector<8x8xf32>
    %73 = arith.truncf %72 : vector<8x8xf32> to vector<8x8xbf16>
    %c8 = arith.constant 8 : index
    %c0_37 = arith.constant 0 : index
    %74 = vector.load %arg10[%c8, %c0_37] : memref<32x32xbf16, #tpu.memory_space<vmem>>, vector<8x32xbf16>
    %cst_38 = arith.constant dense<0.000000e+00> : vector<8x32xf32>
    %75 = tpu.matmul %73, %74, %cst_38 {dimension_numbers = #tpu.dot_dimension_numbers<[1], [0], [0], [1], [0, 0, 1, 1], [], []>} : vector<8x8xbf16>, vector<8x32xbf16>, vector<8x32xf32> -> vector<8x32xf32>
    %76 = arith.addf %54, %75 : vector<8x32xf32>
    %77 = vector.extract_strided_slice %26 {offsets = [0, 16], sizes = [8, 8], strides = [1, 1]} : vector<8x32xbf16> to vector<8x8xbf16>
    %78 = vector.extract_strided_slice %27 {offsets = [0, 16], sizes = [8, 8], strides = [1, 1]} : vector<8x32xbf16> to vector<8x8xbf16>
    %79 = vector.extract_strided_slice %28 {offsets = [0, 16], sizes = [8, 8], strides = [1, 1]} : vector<8x32xbf16> to vector<8x8xbf16>
    %cst_39 = arith.constant dense<0.000000e+00> : vector<8x8xf32>
    %80 = tpu.matmul %77, %78, %cst_39 {dimension_numbers = #tpu.dot_dimension_numbers<[1], [1], [0], [0], [0, 0, 1, 0], [], []>} : vector<8x8xbf16>, vector<8x8xbf16>, vector<8x8xf32> -> vector<8x8xf32>
    %cst_40 = arith.constant -2.38197633E+38 : f32
    %81 = vector.broadcast %cst_40 : f32 to vector<8x8xf32>
    %82 = arith.select %31, %80, %81 : vector<8x8xi1>, vector<8x8xf32>
    %cst_41 = arith.constant dense<0xFF800000> : vector<8xf32>
    %83 = vector.multi_reduction <maximumf>, %82, %cst_41 [1] : vector<8x8xf32> to vector<8xf32>
    %84 = vector.shape_cast %83 : vector<8xf32> to vector<8x1xf32>
    %85 = vector.broadcast %84 : vector<8x1xf32> to vector<8x8xf32>
    %86 = arith.subf %82, %85 : vector<8x8xf32>
    %87 = math.exp %86 : vector<8x8xf32>
    %cst_42 = arith.constant dense<0.000000e+00> : vector<8xf32>
    %88 = vector.multi_reduction <add>, %87, %cst_42 [1] : vector<8x8xf32> to vector<8xf32>
    %89 = vector.shape_cast %88 : vector<8xf32> to vector<8x1xf32>
    %90 = tpu.reciprocal %89 {approx = true} : vector<8x1xf32> -> vector<8x1xf32>
    %91 = vector.broadcast %90 : vector<8x1xf32> to vector<8x8xf32>
    %92 = arith.mulf %87, %91 : vector<8x8xf32>
    %93 = arith.truncf %92 : vector<8x8xf32> to vector<8x8xbf16>
    %cst_43 = arith.constant dense<0.000000e+00> : vector<8x8xf32>
    %94 = tpu.matmul %93, %79, %cst_43 {dimension_numbers = #tpu.dot_dimension_numbers<[1], [0], [0], [1], [0, 0, 1, 1], [], []>} : vector<8x8xbf16>, vector<8x8xbf16>, vector<8x8xf32> -> vector<8x8xf32>
    %95 = arith.truncf %94 : vector<8x8xf32> to vector<8x8xbf16>
    %c16 = arith.constant 16 : index
    %c0_44 = arith.constant 0 : index
    %96 = vector.load %arg10[%c16, %c0_44] : memref<32x32xbf16, #tpu.memory_space<vmem>>, vector<8x32xbf16>
    %cst_45 = arith.constant dense<0.000000e+00> : vector<8x32xf32>
    %97 = tpu.matmul %95, %96, %cst_45 {dimension_numbers = #tpu.dot_dimension_numbers<[1], [0], [0], [1], [0, 0, 1, 1], [], []>} : vector<8x8xbf16>, vector<8x32xbf16>, vector<8x32xf32> -> vector<8x32xf32>
    %98 = arith.addf %76, %97 : vector<8x32xf32>
    %99 = vector.extract_strided_slice %26 {offsets = [0, 24], sizes = [8, 8], strides = [1, 1]} : vector<8x32xbf16> to vector<8x8xbf16>
    %100 = vector.extract_strided_slice %27 {offsets = [0, 24], sizes = [8, 8], strides = [1, 1]} : vector<8x32xbf16> to vector<8x8xbf16>
    %101 = vector.extract_strided_slice %28 {offsets = [0, 24], sizes = [8, 8], strides = [1, 1]} : vector<8x32xbf16> to vector<8x8xbf16>
    %cst_46 = arith.constant dense<0.000000e+00> : vector<8x8xf32>
    %102 = tpu.matmul %99, %100, %cst_46 {dimension_numbers = #tpu.dot_dimension_numbers<[1], [1], [0], [0], [0, 0, 1, 0], [], []>} : vector<8x8xbf16>, vector<8x8xbf16>, vector<8x8xf32> -> vector<8x8xf32>
    %cst_47 = arith.constant -2.38197633E+38 : f32
    %103 = vector.broadcast %cst_47 : f32 to vector<8x8xf32>
    %104 = arith.select %31, %102, %103 : vector<8x8xi1>, vector<8x8xf32>
    %cst_48 = arith.constant dense<0xFF800000> : vector<8xf32>
    %105 = vector.multi_reduction <maximumf>, %104, %cst_48 [1] : vector<8x8xf32> to vector<8xf32>
    %106 = vector.shape_cast %105 : vector<8xf32> to vector<8x1xf32>
    %107 = vector.broadcast %106 : vector<8x1xf32> to vector<8x8xf32>
    %108 = arith.subf %104, %107 : vector<8x8xf32>
    %109 = math.exp %108 : vector<8x8xf32>
    %cst_49 = arith.constant dense<0.000000e+00> : vector<8xf32>
    %110 = vector.multi_reduction <add>, %109, %cst_49 [1] : vector<8x8xf32> to vector<8xf32>
    %111 = vector.shape_cast %110 : vector<8xf32> to vector<8x1xf32>
    %112 = tpu.reciprocal %111 {approx = true} : vector<8x1xf32> -> vector<8x1xf32>
    %113 = vector.broadcast %112 : vector<8x1xf32> to vector<8x8xf32>
    %114 = arith.mulf %109, %113 : vector<8x8xf32>
    %115 = arith.truncf %114 : vector<8x8xf32> to vector<8x8xbf16>
    %cst_50 = arith.constant dense<0.000000e+00> : vector<8x8xf32>
    %116 = tpu.matmul %115, %101, %cst_50 {dimension_numbers = #tpu.dot_dimension_numbers<[1], [0], [0], [1], [0, 0, 1, 1], [], []>} : vector<8x8xbf16>, vector<8x8xbf16>, vector<8x8xf32> -> vector<8x8xf32>
    %117 = arith.truncf %116 : vector<8x8xf32> to vector<8x8xbf16>
    %c24 = arith.constant 24 : index
    %c0_51 = arith.constant 0 : index
    %118 = vector.load %arg10[%c24, %c0_51] : memref<32x32xbf16, #tpu.memory_space<vmem>>, vector<8x32xbf16>
    %cst_52 = arith.constant dense<0.000000e+00> : vector<8x32xf32>
    %119 = tpu.matmul %117, %118, %cst_52 {dimension_numbers = #tpu.dot_dimension_numbers<[1], [0], [0], [1], [0, 0, 1, 1], [], []>} : vector<8x8xbf16>, vector<8x32xbf16>, vector<8x32xf32> -> vector<8x32xf32>
    %120 = arith.addf %98, %119 : vector<8x32xf32>
    %c0_53 = arith.constant 0 : index
    %c0_54 = arith.constant 0 : index
    %121 = vector.load %arg11[%c0_53, %c0_54] : memref<1x32xf32, #tpu.memory_space<vmem>>, vector<1x32xf32>
    %122 = vector.broadcast %121 : vector<1x32xf32> to vector<8x32xf32>
    %123 = arith.addf %120, %122 : vector<8x32xf32>
    %c0_55 = arith.constant 0 : index
    %c0_56 = arith.constant 0 : index
    %c0_57 = arith.constant 0 : index
    %124 = vector.load %arg12[%c0_55, %c0_56, %c0_57] : memref<1x8x32xf32, #tpu.memory_space<vmem>>, vector<1x8x32xf32>
    %125 = vector.shape_cast %124 : vector<1x8x32xf32> to vector<8x32xf32>
    %126 = vector.shape_cast %123 : vector<8x32xf32> to vector<1x8x32xf32>
    tpu.vector_store %arg12[%c0_55, %c0_56, %c0_57], %126 {strides = array<i32>} : memref<1x8x32xf32, #tpu.memory_space<vmem>>, vector<1x8x32xf32>,
    return
  }
  func.func @transform_0(%arg0: i32) -> (i32, i32, i32) {
    %c0_i32 = arith.constant 0 : i32
    %c0_i32_0 = arith.constant 0 : i32
    %c0_i32_1 = arith.constant 0 : i32
    return %arg0, %c0_i32, %c0_i32_0 : i32, i32, i32
  }
  func.func @transform_1(%arg0: i32) -> (i32, i32, i32) {
    %c0_i32 = arith.constant 0 : i32
    %c0_i32_0 = arith.constant 0 : i32
    %c0_i32_1 = arith.constant 0 : i32
    return %arg0, %c0_i32, %c0_i32_0 : i32, i32, i32
  }
  func.func @transform_2(%arg0: i32) -> (i32, i32, i32) {
    %c0_i32 = arith.constant 0 : i32
    %c0_i32_0 = arith.constant 0 : i32
    %c0_i32_1 = arith.constant 0 : i32
    return %arg0, %c0_i32, %c0_i32_0 : i32, i32, i32
  }
  func.func @transform_3(%arg0: i32) -> (i32, i32) {
    %c0_i32 = arith.constant 0 : i32
    %c0_i32_0 = arith.constant 0 : i32
    %c0_i32_1 = arith.constant 0 : i32
    return %c0_i32, %c0_i32_0 : i32, i32
  }
  func.func @transform_4(%arg0: i32) -> (i32, i32) {
    %c0_i32 = arith.constant 0 : i32
    %c0_i32_0 = arith.constant 0 : i32
    %c0_i32_1 = arith.constant 0 : i32
    return %c0_i32, %c0_i32_0 : i32, i32
  }
  func.func @transform_5(%arg0: i32) -> (i32, i32) {
    %c0_i32 = arith.constant 0 : i32
    %c0_i32_0 = arith.constant 0 : i32
    %c0_i32_1 = arith.constant 0 : i32
    return %c0_i32, %c0_i32_0 : i32, i32
  }
  func.func @transform_6(%arg0: i32) -> (i32, i32) {
    %c0_i32 = arith.constant 0 : i32
    %c0_i32_0 = arith.constant 0 : i32
    %c0_i32_1 = arith.constant 0 : i32
    return %c0_i32, %c0_i32_0 : i32, i32
  }
  func.func @transform_7(%arg0: i32) -> (i32, i32) {
    %c0_i32 = arith.constant 0 : i32
    %c0_i32_0 = arith.constant 0 : i32
    %c0_i32_1 = arith.constant 0 : i32
    return %c0_i32, %c0_i32_0 : i32, i32
  }
  func.func @transform_8(%arg0: i32) -> (i32, i32) {
    %c0_i32 = arith.constant 0 : i32
    %c0_i32_0 = arith.constant 0 : i32
    %c0_i32_1 = arith.constant 0 : i32
    return %c0_i32, %c0_i32_0 : i32, i32
  }
  func.func @transform_9(%arg0: i32) -> (i32, i32) {
    %c0_i32 = arith.constant 0 : i32
    %c0_i32_0 = arith.constant 0 : i32
    %c0_i32_1 = arith.constant 0 : i32
    return %c0_i32, %c0_i32_0 : i32, i32
  }
  func.func @transform_10(%arg0: i32) -> (i32, i32) {
    %c0_i32 = arith.constant 0 : i32
    %c0_i32_0 = arith.constant 0 : i32
    %c0_i32_1 = arith.constant 0 : i32
    return %c0_i32, %c0_i32_0 : i32, i32
  }
  func.func @transform_11(%arg0: i32) -> (i32, i32, i32) {
    %c0_i32 = arith.constant 0 : i32
    %c0_i32_0 = arith.constant 0 : i32
    %c0_i32_1 = arith.constant 0 : i32
    return %arg0, %c0_i32, %c0_i32_0 : i32, i32, i32
  }
}

</mosaic_0001>

<bundles_post_ra>
// kernel: tpu_custom_call.1
= control target key start
LH: loop header
LB: loop body
LE: loop exit
PB: predicated region body
PF: predicated region fallthrough
CT: control target
= control target key end

     0   :  { %s2644_s0 = inlined_call_operand.hbm [shape: f32[2,8,32], index: 0, kind: input, shape index: {}]   ;;  %s2645_s1 = inlined_call_operand.hbm [shape: f32[2,8,32], index: 1, kind: input, shape index: {}]   ;;  %s2646_s2 = inlined_call_operand.hbm [shape: f32[2,8,32], index: 2, kind: input, shape index: {}]   ;;  %s2647_s3 = inlined_call_operand.hbm [shape: bf16[32,32], index: 3, kind: input, shape index: {}]   ;;  %s2648_s4 = inlined_call_operand.vmem [shape: f32[1,32], index: 4, kind: input, shape index: {}]   ;;  %s2649_s5 = inlined_call_operand.vmem [shape: bf16[32,32], index: 5, kind: input, shape index: {}]   ;;  %s2650_s6 = inlined_call_operand.vmem [shape: f32[1,32], index: 6, kind: input, shape index: {}]   ;;  %s2651_s7 = inlined_call_operand.hbm [shape: bf16[32,32], index: 7, kind: input, shape index: {}]   ;;  %s2652_s8 = inlined_call_operand.hbm [shape: f32[1,32], index: 8, kind: input, shape index: {}]   ;;  %s2653_s9 = inlined_call_operand.vmem [shape: bf16[32,32], index: 9, kind: input, shape index: {}]   ;;  %s2654_s10 = inlined_call_operand.vmem [shape: f32[1,32], index: 10, kind: input, shape index: {}]   ;;  %s2655_s11 = inlined_call_operand.hbm [shape: f32[2,8,32], index: 11, kind: output, shape index: {}]  }
   0x1   :  { %2680 = sst [smem:[#allocation25_spill]] %s2645_s1 }
   0x2   :  { %2681 = sst [smem:[#allocation26_spill]] %s2647_s3 }
   0x3   :  { %2682 = sst [smem:[#allocation27_spill]] %s2648_s4 }
   0x4   :  { %2683 = sst [smem:[#allocation28_spill]] %s2653_s9 }
   0x5   :  { %2684 = sst [smem:[#allocation29_spill]] %s2654_s10 }
   0x6   :  { %2685 = sst [smem:[#allocation30_spill]] %s2655_s11 }
   0x7   :  { %16 = vsyncpa [#allocation3], 0 }
   0x8   :  { %18 = vsyncpa [#allocation3 + $0x1], 0 }
   0x9   :  { %19 = vsyncpa [#allocation6], 0 }
   0xa   :  { %21 = vsyncpa [#allocation6 + $0x1], 0 }
   0xb   :  { %22 = vsyncpa [#allocation9], 0 }
   0xc   :  { %23 = vsyncpa [#allocation12], 0 }
   0xd   :  { %24 = vsyncpa [#allocation4], 0 }
   0xe   :  { %26 = vsyncpa [#allocation4 + $0x1], 0  ;;  %s2154_s17 = smov 0   ;;  %s2156_s18 = smov 0  }
   0xf   :  { %s2158_s19 = smov 0   ;;  %s2160_s20 = smov 0  }
  0x10 LB: > { %2686 = sst [smem:[#allocation19_spill]] %s2066_s17  ;;  %s2175_s21 = sadd.s32 4294967295, %s2078_s20   ;;  %s2078_s20 = sphi %s2160_s20, %s2728_s20   ;;  %s2074_s19 = sphi %s2158_s19, %s2732_s19   ;;  %s2070_s18 = sphi %s2156_s18, %s2731_s18   ;;  %s2066_s17 = sphi %s2154_s17, %s2730_s17  }
  0x11   : > { %2687 = sst [smem:[#allocation20_spill]] %s2078_s20  ;;  %s1532_s22 = sadd.s32 4294967294, %s2078_s20  }
  0x12   : > { %p52_p0 = scmp.ne.s32.totalorder %s2070_s18, %s2066_s17  ;;  %p2658_p1 = scmp.eq.s32.totalorder %s2175_s21, 0 }
  0x13   : > { %p302_p3 = scmp.eq.s32.totalorder %s1532_s22, 1  ;;  %p1533_p5 = scmp.ge.s32.totalorder %s2078_s20, 1 }
  0x14   : > { %p2184_p4 = por %p2658_p1, %p52_p0  ;;  %p309_p7 = scmp.lt.s32.totalorder %s2078_s20, 3 }
  0x15   : > { %p2189_p6 = por %p302_p3, %p52_p0  ;;  %s2080_s26 = smov [#allocation8]  }
  0x16   : > { %s2688_s23 = scalar_select %p2184_p4, 1, 0 }
  0x17   : > { %s2689_s24 = scalar_select %p2189_p6, 1, 0 }
  0x18   : > { %p2194_p8 = pnand %p1533_p5, %p309_p7  ;;  %s321_s27 = sshll.u32 %s2080_s26, 4  ;;  %s2198_s27 = int_to_ptr.vmem [resolvable:$true] %s321_s27 }
  0x19   : > { %2690 = sst [smem:[#allocation21_spill]] %s2689_s24  ;;  %s2210_s29 = sadd.s32 1, %s2078_s20  }
  0x1a   : > { %s2691_s25 = scalar_select %p2194_p8, 1, 0 }
  0x1b   : > { %p1730_p9 = pneg %p2194_p8  ;;  %2693 = sst [smem:[#allocation22_spill]] %s2210_s29 }
  0x1c   : > { %s39_s30 = sadd.s32 1, %s2074_s19  ;;  %s36_s12 = ssub.s32 %s2078_s20, %s2210_s29 }
  0x1d   : > { %p2205_p11 = pnand %p1730_p9, %p2658_p1  ;;  %s2694_s3 = sld [smem:[#allocation26_spill]] }
  0x1f   : > { %s2692_s28 = scalar_select %p2205_p11, 1, 0 }
  0x20   : > { %p2223_p13 = pneg %p2205_p11 }
  0x22   : > { %s2695_s26 = scalar_select %p2223_p13, 1, 0 }
  0x23   : > { %s1826_s15 = scalar_lea.hbm %s2694_s3, 256 }
  0x24   : > { %p1827_p12 = scmp.ne.s32.totalorder %s2694_s3, %s1826_s15  ;;  %p1833_p5 = scmp.lt.u32.totalorder %s1826_s15, %s2694_s3 }
  0x26   : > { %p1829_p0 = pnand %p2223_p13, %p1827_p12 }
  0x28   : > { %p1830_p3 = pneg %p1829_p0 }
  0x2a   : > { %p1835_p7 = pnand %p1833_p5, %p1830_p3 }
  0x2c   : > { %1838 = shalt.err (!%p1835_p7)
}
  0x2d   : > { %s1839_s13 = scalar_lea.vmem %s2198_s27, 256  ;;  %p1847_p2 = scmp.lt.s32.totalorder %s2198_s27, %s2198_s27 }
  0x2e   : > { %p1840_p9 = scmp.ne.s32.totalorder %s2198_s27, %s1839_s13  ;;  %p1848_p6 = scmp.lt.s32.totalorder %s1839_s13, %s1839_s13 }
  0x30   : > { %p1842_p10 = pnand %p1840_p9, %p2223_p13  ;;  %p1849_p12 = por %p1848_p6, %p1847_p2 }
  0x32   : > { %p1843_p1 = pneg %p1842_p10 }
  0x34   : > { %p1850_p0 = pnand %p1849_p12, %p1843_p1 }
  0x36   : > { %1853 = shalt.err (!%p1850_p0)
}
  0x37   : > { %s2662_s14 = smov 64   ;;  %s2663_s17 = smov 4  }
  0x38   : > { %1733 = dma.hbm_to_vmem [thread:$0]  (!%p2205_p11), %s2694_s3, 256, %s2198_s27, [#allocation9], %s2662_s14, %s2662_s14, %s2663_s17  }
  0x39   : > { %p37_p1 = scmp.eq.s32.totalorder %s36_s12, 0  ;;  %p46_p2 = scmp.ne.s32.totalorder %s2074_s19, %s2070_s18 }
  0x3a   : > { %p47_p6 = scmp.eq.s32.totalorder %s2078_s20, 0  ;;  %p1757_p10 = scmp.lt.s32.totalorder %s2078_s20, 2 }
  0x3b   : > { %s2252_s16 = scalar_select %p37_p1, %s2074_s19, %s39_s30  }
  0x3c   : > { %p48_p3 = por %p47_p6, %p46_p2  ;;  %p2697_p5 = scmp.eq.s32.totalorder %s2175_s21, 1 }
  0x3d   : > { %2696 = sst [smem:[#allocation23_spill]] %s2252_s16  ;;  %s2664_s13 = sand.u32 1, %s2074_s19  }
  0x3e   : > { %p2256_p7 = por %p2697_p5, %p46_p2  ;;  %s2262_s29 = sshll.u32 %s2078_s20, 7 }
  0x3f   : > { %s2266_s11 = sshll.u32 %s2664_s13, 3  ;;  %p2268_p9 = pnand %p1757_p10, %p48_p3 }
  0x40   : > { %s2698_s22 = scalar_select %p2256_p7, 1, 0 }
  0x41   : > { %s2700_s27 = scalar_select %p2268_p9, 1, 0 }
  0x42   : > { %2699 = sst [smem:[#allocation24_spill]] %s2698_s22  ;;  %s392_s30 = sand.u32 1, %s2078_s20  }
  0x43   : > { %s2701_s1 = sld [smem:[#allocation25_spill]]  ;;  %s396_s14 = scalar_lea.vmem [#allocation5], %s2266_s11 }
  0x44   : > { %s403_s17 = sshll.u32 %s396_s14, 4  ;;  %s2282_s13 = scalar_lea.sflag [#allocation6], %s392_s30  ;;  %s2280_s17 = int_to_ptr.vmem [resolvable:$true] %s403_s17 }
  0x45   : > { %p2288_p0 = pneg %p2268_p9 }
  0x47   : > { %s2702_s16 = scalar_select %p2288_p0, 1, 0 }
  0x49   : > { %s2277_s15 = scalar_lea.hbm %s2701_s1, %s2262_s29  ;;  %s1859_s20 = scalar_lea.hbm %s2701_s1, 256 }
  0x4a   : > { %s1854_s3 = scalar_lea.hbm %s2277_s15, 128  ;;  %p1860_p6 = scmp.lt.u32.totalorder %s2277_s15, %s2701_s1 }
  0x4b   : > { %p1855_p12 = scmp.ne.s32.totalorder %s2277_s15, %s1854_s3  ;;  %p1861_p10 = scmp.lt.u32.totalorder %s1859_s20, %s1854_s3 }
  0x4c   : > { %p1863_p5 = scmp.lt.u32.totalorder %s1854_s3, %s2277_s15 }
  0x4d   : > { %p1857_p1 = pnand %p2288_p0, %p1855_p12  ;;  %p1862_p3 = por %p1861_p10, %p1860_p6 }
  0x4f   : > { %p1858_p2 = pneg %p1857_p1  ;;  %p1864_p7 = por %p1863_p5, %p1862_p3 }
  0x51   : > { %p1865_p4 = pnand %p1864_p7, %p1858_p2 }
  0x53   : > { %1868 = shalt.err (!%p1865_p4)
}
  0x54   : > { %s1869_s30 = scalar_lea.vmem %s2280_s17, 128  ;;  %s2083_s12 = smov [#allocation5]  }
  0x55   : > { %p1870_p12 = scmp.ne.s32.totalorder %s2280_s17, %s1869_s30  ;;  %s1874_s24 = sshll.u32 %s2083_s12, 4  ;;  %s1875_s24 = int_to_ptr.vmem [resolvable:$false] %s1874_s24 }
  0x56   : > { %s1876_s22 = scalar_lea.vmem %s1875_s24, 256  ;;  %p1877_p11 = scmp.lt.s32.totalorder %s2280_s17, %s1875_s24 }
  0x57   : > { %p1872_p1 = pnand %p1870_p12, %p2288_p0  ;;  %p1878_p13 = scmp.lt.s32.totalorder %s1876_s22, %s1869_s30 }
  0x59   : > { %p1873_p8 = pneg %p1872_p1  ;;  %p1879_p6 = por %p1878_p13, %p1877_p11 }
  0x5b   : > { %p1880_p10 = pnand %p1879_p6, %p1873_p8 }
  0x5d   : > { %1883 = shalt.err (!%p1880_p10)
}
  0x5e   : > { %1746 = dma.hbm_to_vmem [thread:$0]  (!%p2268_p9), %s2277_s15, 128, %s2280_s17, %s2282_s13  }
  0x5f   : > { %s2084_s3 = smov [#allocation10]   ;;  %s2085_s14 = smov [#allocation11]  }
  0x60   : > { %s343_s20 = sshll.u32 %s2084_s3, 4  ;;  %s357_s1 = sshll.u32 %s2085_s14, 4  ;;  %s344_s20 = int_to_ptr.vmem [resolvable:$true] %s343_s20  ;;  %s358_s1 = int_to_ptr.vmem [resolvable:$true] %s357_s1 }
  0x61   : > { %s1884_s24 = scalar_lea.hbm %s2651_s7, 256  ;;  %p2703_p8 = scmp.ne.s32.totalorder %s2695_s26, 0 }
  0x62   : > { %p1885_p4 = scmp.ne.s32.totalorder %s2651_s7, %s1884_s24  ;;  %p1891_p7 = scmp.lt.u32.totalorder %s1884_s24, %s2651_s7 }
  0x64   : > { %p1887_p11 = pnand %p1885_p4, %p2703_p8 }
  0x66   : > { %p1888_p13 = pneg %p1887_p11 }
  0x68   : > { %p1893_p2 = pnand %p1891_p7, %p1888_p13 }
  0x6a   : > { %1896 = shalt.err (!%p1893_p2)
}
  0x6b   : > { %s1897_s17 = scalar_lea.vmem %s344_s20, 256  ;;  %p1905_p1 = scmp.lt.s32.totalorder %s344_s20, %s344_s20 }
  0x6c   : > { %p1898_p3 = scmp.ne.s32.totalorder %s344_s20, %s1897_s17  ;;  %p1906_p6 = scmp.lt.s32.totalorder %s1897_s17, %s1897_s17 }
  0x6e   : > { %p1900_p5 = pnand %p1898_p3, %p2703_p8  ;;  %p1907_p10 = por %p1906_p6, %p1905_p1 }
  0x70   : > { %p1901_p12 = pneg %p1900_p5 }
  0x72   : > { %p1908_p9 = pnand %p1907_p10, %p1901_p12 }
  0x74   : > { %1911 = shalt.err (!%p1908_p9)
}
  0x75   : > { %p2704_p4 = scmp.ne.s32.totalorder %s2692_s28, 0  ;;  %s2705_s10 = smov 4  }
  0x76   : > { %s2706_s15 = smov 64   ;;  %s1912_s12 = scalar_lea.hbm %s2652_s8, 16 }
  0x77   : > { %1736 = dma.hbm_to_vmem [thread:$0]  (!%p2704_p4), %s2651_s7, 256, %s344_s20, [#allocation9], %s2706_s15, %s2706_s15, %s2705_s10  }
  0x78   : > { %p1913_p11 = scmp.ne.s32.totalorder %s2652_s8, %s1912_s12  ;;  %p1919_p7 = scmp.lt.u32.totalorder %s1912_s12, %s2652_s8 }
  0x7a   : > { %p1915_p9 = pnand %p1913_p11, %p2703_p8 }
  0x7c   : > { %p1916_p13 = pneg %p1915_p9 }
  0x7e   : > { %p1921_p2 = pnand %p1919_p7, %p1916_p13 }
  0x80   : > { %1924 = shalt.err (!%p1921_p2)
}
  0x81   : > { %s1925_s4 = scalar_lea.vmem %s358_s1, 16  ;;  %s1932_s20 = scalar_lea.vmem %s358_s1, 32 }
  0x82   : > { %p1926_p3 = scmp.ne.s32.totalorder %s358_s1, %s1925_s4  ;;  %p1933_p1 = scmp.lt.s32.totalorder %s358_s1, %s358_s1 }
  0x83   : > { %p1934_p6 = scmp.lt.s32.totalorder %s1932_s20, %s1925_s4 }
  0x84   : > { %p1928_p5 = pnand %p1926_p3, %p2703_p8 }
  0x85   : > { %p1935_p10 = por %p1934_p6, %p1933_p1 }
  0x86   : > { %p1929_p12 = pneg %p1928_p5 }
  0x88   : > { %p1936_p0 = pnand %p1935_p10, %p1929_p12 }
  0x8a   : > { %1939 = shalt.err (!%p1936_p0)
}
  0x8b   : > { %1739 = dma.hbm_to_vmem [thread:$0]  (!%p2704_p4), %s2652_s8, 16, %s358_s1, [#allocation12]  }
  0x8c   : > { %s2355_s3 = scalar_lea.hbm %s2644_s0, %s2262_s29  ;;  %s378_s14 = scalar_lea.vmem [#allocation2], %s2266_s11 }
  0x8d   : > { %s385_s28 = sshll.u32 %s378_s14, 4  ;;  %s2364_s30 = scalar_lea.hbm %s2646_s2, %s2262_s29  ;;  %s2358_s28 = int_to_ptr.vmem [resolvable:$true] %s385_s28 }
  0x8e   : > { %s2707_s22 = sand.u32 1, %s2074_s19   ;;  %s1940_s17 = scalar_lea.hbm %s2355_s3, 128 }
  0x8f   : > { %s375_s1 = scalar_lea.sflag [#allocation3], %s2707_s22  ;;  %p1941_p0 = scmp.ne.s32.totalorder %s2355_s3, %s1940_s17 }
  0x90   : > { %p2708_p8 = scmp.ne.s32.totalorder %s2702_s16, 0  ;;  %s1945_s10 = scalar_lea.hbm %s2644_s0, 256 }
  0x91   : > { %p1946_p9 = scmp.lt.u32.totalorder %s2355_s3, %s2644_s0  ;;  %p1947_p13 = scmp.lt.u32.totalorder %s1945_s10, %s1940_s17 }
  0x92   : > { %p1943_p4 = pnand %p1941_p0, %p2708_p8  ;;  %p1949_p2 = scmp.lt.u32.totalorder %s1940_s17, %s2355_s3 }
  0x93   : > { %p1948_p7 = por %p1947_p13, %p1946_p9 }
  0x94   : > { %p1944_p11 = pneg %p1943_p4 }
  0x95   : > { %p1950_p3 = por %p1949_p2, %p1948_p7 }
  0x97   : > { %p1951_p5 = pnand %p1950_p3, %p1944_p11 }
  0x99   : > { %1954 = shalt.err (!%p1951_p5)
}
  0x9a   : > { %s1955_s29 = scalar_lea.vmem %s2358_s28, 128  ;;  %s2086_s9 = smov [#allocation2]  }
  0x9b   : > { %p1956_p12 = scmp.ne.s32.totalorder %s2358_s28, %s1955_s29  ;;  %s1960_s14 = sshll.u32 %s2086_s9, 4  ;;  %s1961_s14 = int_to_ptr.vmem [resolvable:$false] %s1960_s14 }
  0x9c   : > { %s1962_s12 = scalar_lea.vmem %s1961_s14, 256  ;;  %p1963_p10 = scmp.lt.s32.totalorder %s2358_s28, %s1961_s14 }
  0x9d   : > { %p1958_p1 = pnand %p1956_p12, %p2708_p8  ;;  %p1964_p0 = scmp.lt.s32.totalorder %s1962_s12, %s1955_s29 }
  0x9f   : > { %p1959_p6 = pneg %p1958_p1  ;;  %p1965_p4 = por %p1964_p0, %p1963_p10 }
  0xa1   : > { %p1966_p9 = pnand %p1965_p4, %p1959_p6 }
  0xa3   : > { %1969 = shalt.err (!%p1966_p9)
}
  0xa4   : > { %p2709_p11 = scmp.ne.s32.totalorder %s2700_s27, 0  ;;  %s414_s24 = scalar_lea.vmem [#allocation7], %s2266_s11 }
  0xa5   : > { %s421_s22 = sshll.u32 %s414_s24, 4  ;;  %s1970_s17 = scalar_lea.hbm %s2364_s30, 128  ;;  %s422_s22 = int_to_ptr.vmem [resolvable:$true] %s421_s22 }
  0xa6   : > { %1743 = dma.hbm_to_vmem [thread:$0]  (!%p2709_p11), %s2355_s3, 128, %s2358_s28, %s375_s1  }
  0xa7   : > { %p1971_p13 = scmp.ne.s32.totalorder %s2364_s30, %s1970_s17  ;;  %s1975_s10 = scalar_lea.hbm %s2646_s2, 256 }
  0xa8   : > { %p1976_p3 = scmp.lt.u32.totalorder %s2364_s30, %s2646_s2  ;;  %p1977_p5 = scmp.lt.u32.totalorder %s1975_s10, %s1970_s17 }
  0xa9   : > { %p1973_p7 = pnand %p1971_p13, %p2708_p8  ;;  %p1979_p1 = scmp.lt.u32.totalorder %s1970_s17, %s2364_s30 }
  0xaa   : > { %p1978_p12 = por %p1977_p5, %p1976_p3 }
  0xab   : > { %p1974_p2 = pneg %p1973_p7 }
  0xac   : > { %p1980_p6 = por %p1979_p1, %p1978_p12 }
  0xae   : > { %p1981_p10 = pnand %p1980_p6, %p1974_p2 }
  0xb0   : > { %1984 = shalt.err (!%p1981_p10)
}
  0xb1   : > { %s1985_s11 = scalar_lea.vmem %s422_s22, 128  ;;  %s2087_s3 = smov [#allocation7]  }
  0xb2   : > { %p1986_p0 = scmp.ne.s32.totalorder %s422_s22, %s1985_s11  ;;  %s1990_s28 = sshll.u32 %s2087_s3, 4  ;;  %s1991_s28 = int_to_ptr.vmem [resolvable:$false] %s1990_s28 }
  0xb3   : > { %s1992_s1 = scalar_lea.vmem %s1991_s28, 256  ;;  %p1993_p13 = scmp.lt.s32.totalorder %s422_s22, %s1991_s28 }
  0xb4   : > { %p1988_p4 = pnand %p1986_p0, %p2708_p8  ;;  %p1994_p7 = scmp.lt.s32.totalorder %s1992_s1, %s1985_s11 }
  0xb6   : > { %p1989_p9 = pneg %p1988_p4  ;;  %p1995_p11 = por %p1994_p7, %p1993_p13 }
  0xb8   : > { %p1996_p3 = pnand %p1995_p11, %p1989_p9 }
  0xba   : > { %1999 = shalt.err (!%p1996_p3)
}
  0xbb   : > { %p2710_p5 = scmp.ne.s32.totalorder %s2700_s27, 0  ;;  %p2711_p2 = scmp.ne.s32.totalorder %s2691_s25, 0 }
  0xbc   : > { %s2411_s16 = sand.u32 (!%p2711_p2), 1, %s2070_s18   ;;  %p2712_p8 = scmp.ne.s32.totalorder (!%p2711_p2), %s2688_s23, 0 }
  0xbd   : > { %1749 = dma.hbm_to_vmem [thread:$0]  (!%p2710_p5), %s2364_s30, 128, %s422_s22, %s2282_s13  }
  0xbe   : > { %430 = sbr.rel (%p2711_p2) target bundleno = 2817 (0xb01), region = 64  ;;  %s2414_s29 = sshll.u32 (!%p2711_p2), %s2411_s16, 3 }
  0xbf   : > { %s433_s9 = scalar_lea.sflag (!%p2711_p2), [#allocation3], %s2411_s16  ;;  %s436_s14 = scalar_lea.vmem (!%p2711_p2), [#allocation2], %s2414_s29 }
  0xc5   : > { %2045 = dma.done.wait (%p2712_p8), %s433_s9, 128  }
  0xc6   : > { %2047 = vsyncadd (%p2712_p8), %s433_s9, 4294967168  ;;  %s441_s25 = sand.u32 1, %s2175_s21   ;;  %s445_s27 = scalar_lea.vmem [#allocation5], %s2414_s29 }
  0xc7   : > { %s442_s13 = scalar_lea.sflag [#allocation6], %s441_s25 }
  0xc8   : > { %2049 = dma.done.wait (%p2712_p8), %s442_s13, 256  }
  0xc9   : > { %2051 = vsyncadd (%p2712_p8), %s442_s13, 4294967040  ;;  %s454_s30 = scalar_lea.vmem [#allocation7], %s2414_s29  ;;  %p2713_p11 = scmp.eq.s32.totalorder %s2175_s21, 0 }
  0xcb   : > { %2053 = dma.done.wait (%p2713_p11), [#allocation9], 512   ;;  %p2714_p12 = pmov %p2713_p11 }
  0xcc   : > { %p2715_p1 = pmov %p2713_p11 }
  0xcd   : > { %2055 = vsyncadd (%p2714_p12), [#allocation9], 4294966784 }
  0xce   : > { %2057 = dma.done.wait (%p2715_p1), [#allocation12], 16   ;;  %p2716_p6 = pmov %p2715_p1 }
  0xcf   : > { %v2088_v0 = vmov 0.0   ;;  %vm2089_vm0 = vmmov 0   ;;  %v1804_v1 = vld [vmem:[%s2649_s5] sm:$0xff]   ;;  %v1805_v2 = vld [vmem:[#allocation8] sm:$0xff]   ;;  %v1806_v3 = vld [vmem:[%s2649_s5 + $0x8] sm:$0xff]   ;;  %vm545_vm1 = vcmask 261120   ;;  %v725_v32 = vlaneseq }
  0xd0   : > { %2059 = vsyncadd (%p2716_p6), [#allocation12], 4294967280  ;;  %1622 = vmatprep.subr.bf16.mxu1 %v2088_v0  ;;  %1614 = vmatprep.subr.bf16.mxu0 %v2088_v0  ;;  %v518_v4 = vld [vmem:[%s445_s27] sm:$0xff]  ;;  %v516_v6 = vld [vmem:[%s436_s14] sm:$0xff]  ;;  %s2717_s15 = sld [smem:[#allocation27_spill]]  ;;  %vm730_vm2 = vcmask 64512  }
  0xd1   : > { %1626 = vmatprep.mubr.msk.bf16.mxu1 %vm2089_vm0, %v2088_v0  ;;  %1618 = vmatprep.mubr.msk.bf16.mxu0 %vm2089_vm0, %v2088_v0  ;;  %v1807_v5 = vld [vmem:[#allocation8 + $0x8] sm:$0xff]   ;;  %v519_v7 = vpack.c.bf16 %v518_v4, %v518_v4  ;;  %v517_v8 = vpack.c.bf16 %v516_v6, %v516_v6  ;;  %v1556_v9 = vld [vmem:[%s2650_s6] ss:$0 sm:$0xff]  ;;  %s2090_s26 = smov 120   ;;  %v1809_v26 = vld [vmem:[#allocation10 + $0x8] sm:$0xff]   ;;  %v2492_v33 = vshrl.u32 %v725_v32, 7 }
  0xd2   : > { %1623 = vmatpush3.bf16.msra.mxu1 %v1804_v1  ;;  %1615 = vmatpush3.bf16.msra.mxu0 %v1805_v2  ;;  %v1808_v25 = vld [vmem:[#allocation10] sm:$0xff]   ;;  %v2494_v34 = vand.u32 127, %v725_v32  ;;  %v1560_v56 = vld [vmem:[#allocation11] ss:$0 sm:$0xff]  ;;  %s2091_s11 = smov 112   ;;  %vm793_vm4 = vcmask 1043456  }
  0xd3   : > { %1624 = vmatprep.subr.bf16.mxu1 %v2088_v0  ;;  %1616 = vmatprep.subr.bf16.mxu0 %v2088_v0  ;;  %v520_v27 = vld [vmem:[%s454_s30] sm:$0xff]  ;;  %s2718_s1 = sld [smem:[#allocation28_spill]]  ;;  %s2092_s25 = smov 104  }
  0xd4   : > { %v521_v28 = vpack.c.bf16 %v520_v27, %v520_v27  ;;  %vm729_vm3 = vcmp.le.s32.totalorder %v2494_v34, %v2492_v33  ;;  %s2719_s22 = sld [smem:[#allocation29_spill]]  ;;  %s2720_s17 = sld [smem:[#allocation24_spill]] }
  0xd5   : > { %s1578_s4 = sshll.u32 %s2175_s21, 7  ;;  %s514_s20 = scalar_lea.vmem [#allocation13], %s2414_s29 }
  0xd6   : > { %1625 = vmatpush3.bf16.msra.mxu1 %v1806_v3  ;;  %1617 = vmatpush3.bf16.msra.mxu0 %v1807_v5  ;;  %v1552_v10 = vld [vmem:[%s2717_s15] ss:$0 sm:$0xff]  ;;  %s1390_s10 = sshll.u32 %s514_s20, 4  ;;  %s1377_s21 = scalar_lea.sflag [#allocation4], %s2411_s16  ;;  %s2601_s10 = int_to_ptr.vmem [resolvable:$true] %s1390_s10 }
  0xd7   : > { %1638 = vmatprep.subr.bf16.mxu1 %v2088_v0  ;;  %1630 = vmatprep.subr.bf16.mxu0 %v2088_v0  ;;  %s2000_s29 = scalar_lea.vmem %s2601_s10, 128  ;;  %s2093_s28 = smov [#allocation13]  }
  0xd8   : > { %p2001_p10 = scmp.ne.s32.totalorder %s2601_s10, %s2000_s29  ;;  %s2004_s9 = sshll.u32 %s2093_s28, 4  ;;  %s2005_s9 = int_to_ptr.vmem [resolvable:$false] %s2004_s9 }
  0xd9   : > { %1627 = vmatmul.mubr.msk.bf16.vlgmr.msra.gmra.mrb[0].mxu1 %vm545_vm1, %v519_v7  ;;  %1619 = vmatmul.mubr.msk.bf16.vlgmr.msra.gmra.mrb[0].mxu0 %vm545_vm1, %v517_v8  ;;  %v954_v6 = vld [vmem:[%s2718_s1 + $0x4] sm:$0xf]  ;;  %s2006_s14 = scalar_lea.vmem %s2005_s9, 256  ;;  %p2007_p13 = scmp.lt.s32.totalorder %s2601_s10, %s2005_s9 }
  0xda   : > { %1640 = vmatprep.mubr.msk.bf16.mxu1 %vm2089_vm0, %v2088_v0  ;;  %1634 = vmatprep.mubr.msk.bf16.mxu0 %vm2089_vm0, %v2088_v0  ;;  %v959_v7 = vsel %vm793_vm4, %v954_v6, 0  ;;  %p2722_p0 = scmp.ne.s32.totalorder %s2720_s17, 0  ;;  %p2008_p7 = scmp.lt.s32.totalorder %s2006_s14, %s2000_s29 }
  0xdb   : > { %1631 = vmatpush3.bf16.msra.mxu0 %v1808_v25 }
  0xdc   : > { %1632 = vmatprep.subr.bf16.mxu0 %v2088_v0  ;;  %p2002_p4 = pnand %p2001_p10, %p2722_p0  ;;  %p2009_p3 = por %p2008_p7, %p2007_p13 }
  0xde   : > { %p2003_p9 = pneg %p2002_p4 }
  0xdf   : > { %1633 = vmatpush3.bf16.msra.mxu0 %v1809_v26 }
  0xe0   : > { %1644 = vmatprep.subr.bf16.mxu0 %v2088_v0  ;;  %p2010_p5 = pnand %p2009_p3, %p2003_p9 }
  0xe2   : > { %1635 = vmatmul.mubr.msk.bf16.vlgmr.msra.gmra.mrb[4].mxu0 %vm545_vm1, %v521_v28 }
  0xe3   : > { %1646 = vmatprep.mubr.msk.bf16.mxu0 %vm2089_vm0, %v2088_v0 }
 0x1ac   : > { %v649_v11 = vpop.f32.mrb[0].mxu1  ;;  %v583_v14 = vpop.f32.mrb[0].mxu0 }
 0x1ad   : > { %v650_v12 = vadd.f32 %v1556_v9, %v649_v11  ;;  %v1628_v13 = vpop.f32.mrb[1].mxu1  ;;  %v584_v16 = vadd.f32 %v1552_v10, %v583_v14  ;;  %v1620_v17 = vpop.f32.mrb[1].mxu0 }
 0x1ae   : > { %v652_v15 = vpop.f32.mrb[2].mxu1  ;;  %v586_v20 = vpop.f32.mrb[2].mxu0 }
 0x1af   : > { %v2465_v18 = vpack.c.bf16 %v650_v12, %v650_v12  ;;  %v1629_v19 = vpop.f32.mrb[3].mxu1  ;;  %v721_v21 = vmul.f32 0.35355338, %v584_v16  ;;  %v1621_v22 = vpop.f32.mrb[3].mxu0  ;;  %v838_v12 = vld [vmem:[%s2718_s1] sm:$0xf] }
 0x1b0   : > { %v1005_v15 = vsel %vm793_vm4, %v838_v12, 0 }
 0x1b1   : > { %843 = vrot.lane.b32.xlu0 %v2465_v18, %s2090_s26  ;;  %v735_v23 = vsel %vm730_vm2, %v2465_v18, 0  ;;  %v2471_v24 = vpack.c.bf16 %v721_v21, %v721_v21 }
 0x1b2   : > { %1639 = vmatpush3.bf16.xpose.msra.mxu1 %v735_v23 }
 0x1b3   : > { %1650 = vmatprep.subr.bf16.mxu1 %v2088_v0 }
 0x1b5   : > { %840 = vrot.lane.b32.xlu0 %v2471_v24, %s2090_s26  ;;  %v715_v50 = vpop.f32.mrb[4].mxu0 }
 0x1b6   : > { %v1636_v51 = vpop.f32.mrb[5].mxu0  ;;  %v716_v57 = vadd.f32 %v1560_v56, %v715_v50 }
 0x1b7   : > { %v718_v52 = vpop.f32.mrb[6].mxu0 }
 0x1b8   : > { %v1637_v53 = vpop.f32.mrb[7].mxu0  ;;  %v2507_v58 = vpack.c.bf16 %v716_v57, %v716_v57 }
 0x1b9   : > { %1641 = vmatmul.mubr.msk.bf16.vlgmr.msra.gmra.mrb[4].mxu1 %vm730_vm2, %v2471_v24 }
 0x1ba   : > { %1652 = vmatprep.mubr.msk.bf16.mxu1 %vm2089_vm0, %v2088_v0  ;;  %v795_v59 = vsel %vm793_vm4, %v2507_v58, 0 }
 0x1bb   : > { %1645 = vmatpush3.bf16.msra.mxu0 %v795_v59 }
 0x1bc   : > { %1656 = vmatprep.subr.bf16.mxu0 %v2088_v0 }
 0x223   : > { %v844_v29 = vpop.permute.xlu0 %843 }
 0x224   : > { %v849_v30 = vsel %vm730_vm2, %v844_v29, 0 }
 0x225   : > { %1651 = vmatpush3.bf16.xpose.msra.mxu1 %v849_v30 }
 0x226   : > { %1662 = vmatprep.subr.bf16.mxu1 %v2088_v0 }
 0x227   : > { %v841_v31 = vpop.permute.xlu0 %840 }
 0x22c   : > { %1653 = vmatmul.mubr.msk.bf16.vlgmr.msra.gmra.mrb[8].mxu1 %vm730_vm2, %v841_v31 }
 0x22d   : > { %1664 = vmatprep.mubr.msk.bf16.mxu1 %vm2089_vm0, %v2088_v0  ;;  %1663 = vmatpush3.bf16.msra.mxu1 %v959_v7 }
 0x22e   : > { %1674 = vmatprep.subr.bf16.mxu1 %v2088_v0 }
 0x28c   : > { %v771_v35 = vpop.f32.mrb[4].mxu1 }
 0x28d   : > { %v777_v36 = vsel %vm729_vm3, %v771_v35, -2.3819763e+38  ;;  %v1642_v37 = vpop.f32.mrb[5].mxu1 }
 0x28e   : > { %v774_v38 = vpop.f32.mrb[6].mxu1  ;;  %v778_v39 = vsel %vm730_vm2, %v777_v36, -inf }
 0x28f   : > { %779 = vmax.xlane.f32.xlu1 %v778_v39  ;;  %v1643_v40 = vpop.f32.mrb[7].mxu1 }
 0x2ff   : > { %v885_v41 = vpop.f32.mrb[8].mxu1 }
 0x300   : > { %v891_v42 = vsel %vm729_vm3, %v885_v41, -2.3819763e+38  ;;  %v1654_v43 = vpop.f32.mrb[9].mxu1 }
 0x301   : > { %v888_v44 = vpop.f32.mrb[10].mxu1  ;;  %v892_v45 = vsel %vm730_vm2, %v891_v42, -inf }
 0x302   : > { %893 = vmax.xlane.f32.xlu1 %v892_v45  ;;  %v1655_v46 = vpop.f32.mrb[11].mxu1 }
 0x31c   : > { %v780_v47 = vpop.xlane.xlu1 %779 }
 0x31d   : > { %v781_v48 = vsub.f32 %v777_v36, %v780_v47 }
 0x31f   : > { %v782_v49 = vmul.f32 1.442695, %v781_v48 }
 0x321   : > { %1810 = vpow2.f32 %v782_v49 }
 0x32b   : > { %v1811_v54 = vpop.eup %1810 }
 0x32c   : > { %v784_v55 = vsel %vm730_vm2, %v1811_v54, 0.0 }
 0x32d   : > { %785 = vadd.xlane.f32.xlu0 %v784_v55 }
 0x343   : > { %1110 = vrot.lane.b32.xlu0 %v2507_v58, %s2091_s11 }
 0x38f   : > { %v894_v60 = vpop.xlane.xlu1 %893 }
 0x390   : > { %v895_v61 = vsub.f32 %v891_v42, %v894_v60 }
 0x392   : > { %v896_v62 = vmul.f32 1.442695, %v895_v61 }
 0x394   : > { %1812 = vpow2.f32 %v896_v62 }
 0x39e   : > { %v1813_v63 = vpop.eup %1812 }
 0x39f   : > { %v898_v1 = vsel %vm730_vm2, %v1813_v63, 0.0 }
 0x3a0   : > { %899 = vadd.xlane.f32.xlu1 %v898_v1 }
 0x3b1   : > { %905 = vrot.lane.b32.xlu1 %v2507_v58, %s2090_s26 }
 0x3b5   : > { %1049 = vrot.lane.b32.xlu1 %v2465_v18, %s2091_s11 }
 0x3b9   : > { %1047 = vrot.lane.b32.xlu1 %v2471_v24, %s2091_s11  ;;  %s2721_s11 = sld [smem:[#allocation30_spill]] }
 0x3ba   : > { %v786_v2 = vpop.xlane.xlu0 %785 }
 0x3bb   : > { %1814 = vrcp.f32 %v786_v2 }
 0x3be   : > { %v1111_v16 = vpop.permute.xlu0 %1110 }
 0x3bf   : > { %v1116_v22 = vsel %vm793_vm4, %v1111_v16, 0  ;;  %s2599_s3 = scalar_lea.hbm %s2721_s11, %s1578_s4 }
 0x3c5   : > { %v1815_v3 = vpop.eup %1814 }
 0x3c6   : > { %v788_v4 = vmul.f32 %v1815_v3, %v1811_v54 }
 0x3c8   : > { %v789_v5 = vpack.c.bf16 %v788_v4, %v788_v4 }
 0x3ca   : > { %1647 = vmatmul.mubr.msk.bf16.vlgmr.msra.gmra.mrb[8].mxu0 %vm730_vm2, %v789_v5 }
 0x3cb   : > { %1658 = vmatprep.mubr.msk.bf16.mxu0 %vm2089_vm0, %v2088_v0 }
 0x42d   : > { %v900_v8 = vpop.xlane.xlu1 %899 }
 0x42e   : > { %1816 = vrcp.f32 %v900_v8 }
 0x431   : > { %v906_v9 = vpop.permute.xlu1 %905 }
 0x432   : > { %v911_v10 = vsel %vm793_vm4, %v906_v9, 0 }
 0x433   : > { %1657 = vmatpush3.bf16.msra.mxu0 %v911_v10 }
 0x434   : > { %1668 = vmatprep.subr.bf16.mxu0 %v2088_v0 }
 0x435   : > { %v1050_v25 = vpop.permute.xlu1 %1049 }
 0x436   : > { %v1055_v30 = vsel %vm730_vm2, %v1050_v25, 0 }
 0x438   : > { %v1817_v11 = vpop.eup %1816 }
 0x439   : > { %v902_v13 = vmul.f32 %v1817_v11, %v1813_v63  ;;  %v1048_v32 = vpop.permute.xlu1 %1047 }
 0x43b   : > { %v903_v14 = vpack.c.bf16 %v902_v13, %v902_v13 }
 0x43d   : > { %1659 = vmatmul.mubr.msk.bf16.vlgmr.msra.gmra.mrb[12].mxu0 %vm730_vm2, %v903_v14 }
 0x43e   : > { %1669 = vmatpush3.bf16.msra.mxu0 %v1005_v15  ;;  %1670 = vmatprep.mubr.msk.bf16.mxu0 %vm2089_vm0, %v2088_v0 }
 0x43f   : > { %1680 = vmatprep.subr.bf16.mxu0 %v2088_v0 }
 0x49d   : > { %v831_v17 = vpop.f32.mrb[8].mxu0 }
 0x49e   : > { %v837_v19 = vpack.c.bf16 %v831_v17, %v831_v17  ;;  %v1648_v20 = vpop.f32.mrb[9].mxu0 }
 0x49f   : > { %v834_v21 = vpop.f32.mrb[10].mxu0 }
 0x4a0   : > { %v1649_v23 = vpop.f32.mrb[11].mxu0  ;;  %1671 = vmatmul.mubr.msk.bf16.vlgmr.msra.gmra.mrb[16].mxu0 %vm730_vm2, %v837_v19 }
 0x4a1   : > { %1681 = vmatpush3.bf16.msra.mxu0 %v1116_v22  ;;  %1682 = vmatprep.mubr.msk.bf16.mxu0 %vm2089_vm0, %v2088_v0 }
 0x4a2   : > { %1692 = vmatprep.subr.bf16.mxu0 %v2088_v0 }
 0x510   : > { %v947_v26 = vpop.f32.mrb[12].mxu0 }
 0x511   : > { %v953_v27 = vpack.c.bf16 %v947_v26, %v947_v26  ;;  %v1660_v28 = vpop.f32.mrb[13].mxu0 }
 0x512   : > { %v950_v29 = vpop.f32.mrb[14].mxu0 }
 0x513   : > { %v1661_v31 = vpop.f32.mrb[15].mxu0  ;;  %1665 = vmatmul.mubr.msk.bf16.vlgmr.msra.gmra.mrb[12].mxu1 %vm730_vm2, %v953_v27 }
 0x514   : > { %1675 = vmatpush3.bf16.xpose.msra.mxu1 %v1055_v30  ;;  %1676 = vmatprep.mubr.msk.bf16.mxu1 %vm2089_vm0, %v2088_v0 }
 0x515   : > { %1686 = vmatprep.subr.bf16.mxu1 %v2088_v0 }
 0x51b   : > { %1677 = vmatmul.mubr.msk.bf16.vlgmr.msra.gmra.mrb[16].mxu1 %vm730_vm2, %v1048_v32 }
 0x51c   : > { %1688 = vmatprep.mubr.msk.bf16.mxu1 %vm2089_vm0, %v2088_v0 }
 0x573   : > { %v1041_v35 = vpop.f32.mrb[16].mxu0 }
 0x574   : > { %v1672_v36 = vpop.f32.mrb[17].mxu0 }
 0x575   : > { %v1044_v37 = vpop.f32.mrb[18].mxu0 }
 0x576   : > { %v1673_v38 = vpop.f32.mrb[19].mxu0 }
 0x5e6   : > { %v995_v39 = vpop.f32.mrb[12].mxu1 }
 0x5e7   : > { %v2549_v40 = vadd.f32 %v1041_v35, %v995_v39  ;;  %v1666_v41 = vpop.f32.mrb[13].mxu1  ;;  %v1576_v35 = vld [vmem:[%s2719_s22] ss:$0 sm:$0xff] }
 0x5e8   : > { %v998_v42 = vpop.f32.mrb[14].mxu1 }
 0x5e9   : > { %v1667_v43 = vpop.f32.mrb[15].mxu1 }
 0x5ee   : > { %v1091_v44 = vpop.f32.mrb[16].mxu1 }
 0x5ef   : > { %v1097_v45 = vsel %vm729_vm3, %v1091_v44, -2.3819763e+38  ;;  %v1678_v46 = vpop.f32.mrb[17].mxu1 }
 0x5f0   : > { %v1094_v47 = vpop.f32.mrb[18].mxu1  ;;  %v1098_v48 = vsel %vm730_vm2, %v1097_v45, -inf }
 0x5f1   : > { %1099 = vmax.xlane.f32.xlu1 %v1098_v48  ;;  %v1679_v49 = vpop.f32.mrb[19].mxu1 }
 0x67e   : > { %v1100_v50 = vpop.xlane.xlu1 %1099 }
 0x67f   : > { %v1101_v51 = vsub.f32 %v1097_v45, %v1100_v50 }
 0x681   : > { %v1102_v52 = vmul.f32 1.442695, %v1101_v51 }
 0x683   : > { %1818 = vpow2.f32 %v1102_v52 }
 0x68d   : > { %v1819_v53 = vpop.eup %1818 }
 0x68e   : > { %v1104_v54 = vsel %vm730_vm2, %v1819_v53, 0.0 }
 0x68f   : > { %1105 = vadd.xlane.f32.xlu0 %v1104_v54 }
 0x6a5   : > { %1209 = vrot.lane.b32.xlu0 %v2465_v18, %s2092_s25 }
 0x6a9   : > { %1207 = vrot.lane.b32.xlu0 %v2471_v24, %s2092_s25  ;;  %v1159_v24 = vld [vmem:[%s2718_s1 + $0x8] sm:$0xf] }
 0x6aa   : > { %v1164_v62 = vsel %vm793_vm4, %v1159_v24, 0 }
 0x6ab   : > { %1687 = vmatpush3.bf16.msra.mxu1 %v1164_v62 }
 0x6ac   : > { %1698 = vmatprep.subr.bf16.mxu1 %v2088_v0 }
 0x71c   : > { %v1106_v55 = vpop.xlane.xlu0 %1105 }
 0x71d   : > { %1820 = vrcp.f32 %v1106_v55 }
 0x720   : > { %v1210_v59 = vpop.permute.xlu0 %1209 }
 0x721   : > { %v1215_v61 = vsel %vm730_vm2, %v1210_v59, 0 }
 0x724   : > { %v1208_v18 = vpop.permute.xlu0 %1207 }
 0x727   : > { %v1821_v56 = vpop.eup %1820 }
 0x728   : > { %v1108_v57 = vmul.f32 %v1821_v56, %v1819_v53 }
 0x72a   : > { %v1109_v60 = vpack.c.bf16 %v1108_v57, %v1108_v57 }
 0x72c   : > { %1683 = vmatmul.mubr.msk.bf16.vlgmr.msra.gmra.mrb[20].mxu0 %vm730_vm2, %v1109_v60 }
 0x72d   : > { %1693 = vmatpush3.bf16.xpose.msra.mxu0 %v1215_v61  ;;  %1694 = vmatprep.mubr.msk.bf16.mxu0 %vm2089_vm0, %v2088_v0 }
 0x72e   : > { %1704 = vmatprep.subr.bf16.mxu0 %v2088_v0 }
 0x734   : > { %1695 = vmatmul.mubr.msk.bf16.vlgmr.msra.gmra.mrb[24].mxu0 %vm730_vm2, %v1208_v18 }
 0x735   : > { %1706 = vmatprep.mubr.msk.bf16.mxu0 %vm2089_vm0, %v2088_v0 }
 0x7ff   : > { %v1152_v63 = vpop.f32.mrb[20].mxu0 }
 0x800   : > { %v1158_v1 = vpack.c.bf16 %v1152_v63, %v1152_v63  ;;  %v1684_v2 = vpop.f32.mrb[21].mxu0 }
 0x801   : > { %v1155_v3 = vpop.f32.mrb[22].mxu0 }
 0x802   : > { %v1685_v4 = vpop.f32.mrb[23].mxu0  ;;  %1689 = vmatmul.mubr.msk.bf16.vlgmr.msra.gmra.mrb[20].mxu1 %vm730_vm2, %v1158_v1 }
 0x803   : > { %1700 = vmatprep.mubr.msk.bf16.mxu1 %vm2089_vm0, %v2088_v0  ;;  %v1319_v0 = vld [vmem:[%s2718_s1 + $0xc] sm:$0xf] }
 0x804   : > { %v1324_v33 = vsel %vm793_vm4, %v1319_v0, 0 }
 0x805   : > { %1705 = vmatpush3.bf16.msra.mxu0 %v1324_v33 }
 0x807   : > { %v1251_v5 = vpop.f32.mrb[24].mxu0 }
 0x808   : > { %v1257_v6 = vsel %vm729_vm3, %v1251_v5, -2.3819763e+38  ;;  %v1696_v7 = vpop.f32.mrb[25].mxu0 }
 0x809   : > { %v1254_v8 = vpop.f32.mrb[26].mxu0  ;;  %v1258_v9 = vsel %vm730_vm2, %v1257_v6, -inf }
 0x80a   : > { %1259 = vmax.xlane.f32.xlu0 %v1258_v9  ;;  %v1697_v10 = vpop.f32.mrb[27].mxu0 }
 0x897   : > { %v1260_v11 = vpop.xlane.xlu0 %1259 }
 0x898   : > { %v1261_v12 = vsub.f32 %v1257_v6, %v1260_v11 }
 0x89a   : > { %v1262_v13 = vmul.f32 1.442695, %v1261_v12 }
 0x89c   : > { %1822 = vpow2.f32 %v1262_v13 }
 0x8a6   : > { %v1823_v14 = vpop.eup %1822 }
 0x8a7   : > { %v1264_v15 = vsel %vm730_vm2, %v1823_v14, 0.0 }
 0x8a8   : > { %1265 = vadd.xlane.f32.xlu1 %v1264_v15 }
 0x8b9   : > { %1270 = vrot.lane.b32.xlu1 %v2507_v58, %s2092_s25 }
 0x8d5   : > { %v1200_v34 = vpop.f32.mrb[20].mxu1 }
 0x8d6   : > { %v1206_v16 = vadd.f32 %v1200_v34, %v2549_v40  ;;  %v1690_v17 = vpop.f32.mrb[21].mxu1 }
 0x8d7   : > { %v1203_v19 = vpop.f32.mrb[22].mxu1 }
 0x8d8   : > { %v1691_v20 = vpop.f32.mrb[23].mxu1 }
 0x935   : > { %v1266_v21 = vpop.xlane.xlu1 %1265 }
 0x936   : > { %1824 = vrcp.f32 %v1266_v21 }
 0x939   : > { %v1271_v22 = vpop.permute.xlu1 %1270 }
 0x93a   : > { %v1276_v58 = vsel %vm793_vm4, %v1271_v22, 0 }
 0x93b   : > { %1699 = vmatpush3.bf16.msra.mxu1 %v1276_v58 }
 0x940   : > { %v1825_v23 = vpop.eup %1824 }
 0x941   : > { %v1268_v25 = vmul.f32 %v1825_v23, %v1823_v14 }
 0x943   : > { %v1269_v26 = vpack.c.bf16 %v1268_v25, %v1268_v25 }
 0x945   : > { %1701 = vmatmul.mubr.msk.bf16.vlgmr.msra.gmra.mrb[24].mxu1 %vm730_vm2, %v1269_v26 }
 0xa18   : > { %v1312_v27 = vpop.f32.mrb[24].mxu1 }
 0xa19   : > { %v1318_v28 = vpack.c.bf16 %v1312_v27, %v1312_v27  ;;  %v1702_v29 = vpop.f32.mrb[25].mxu1 }
 0xa1a   : > { %v1315_v30 = vpop.f32.mrb[26].mxu1 }
 0xa1b   : > { %v1703_v31 = vpop.f32.mrb[27].mxu1  ;;  %1707 = vmatmul.mubr.msk.bf16.vlgmr.msra.gmra.mrb[28].mxu0 %vm730_vm2, %v1318_v28 }
 0xaee   : > { %v1360_v32 = vpop.f32.mrb[28].mxu0 }
 0xaef   : > { %v1366_v36 = vadd.f32 %v1360_v32, %v1206_v16  ;;  %v1708_v37 = vpop.f32.mrb[29].mxu0 }
 0xaf0   : > { %v1363_v38 = vpop.f32.mrb[30].mxu0 }
 0xaf1   : > { %v1374_v39 = vadd.f32 %v1576_v35, %v1366_v36  ;;  %v1709_v40 = vpop.f32.mrb[31].mxu0 }
 0xaf3   : > { %1375 = vst.msk [vmem:[%s514_s20] sm:$0xff] %vm545_vm1, %v1374_v39 }
 0xaf4   : > { %2013 = shalt.err (!%p2010_p5)
}
 0xaf5   : > { %s2014_s16 = scalar_lea.hbm %s2599_s3, 128  ;;  %s2018_s27 = scalar_lea.hbm %s2721_s11, 256 }
 0xaf6   : > { %p2015_p2 = scmp.ne.s32.totalorder %s2599_s3, %s2014_s16  ;;  %p2019_p12 = scmp.lt.u32.totalorder %s2599_s3, %s2721_s11 }
 0xaf7   : > { %p2020_p1 = scmp.lt.u32.totalorder %s2018_s27, %s2014_s16  ;;  %p2022_p10 = scmp.lt.u32.totalorder %s2014_s16, %s2599_s3 }
 0xaf8   : > { %p2016_p8 = pnand %p2015_p2, %p2722_p0 }
 0xaf9   : > { %p2021_p6 = por %p2020_p1, %p2019_p12 }
 0xafa   : > { %p2017_p11 = pneg %p2016_p8 }
 0xafb   : > { %p2023_p4 = por %p2022_p10, %p2021_p6 }
 0xafd   : > { %p2024_p9 = pnand %p2023_p4, %p2017_p11 }
 0xaff   : > { %2027 = shalt.err (!%p2024_p9)
}
 0xb00   : > { %1728 = dma.vmem_to_hbm [thread:$0]  (%p2722_p0), %s2601_s10, 128, %s2599_s3, %s1377_s21  }
 0xb01 PF: > { %s2723_s12 = sld [smem:[#allocation19_spill]]  ;;  %s2724_s24 = sld [smem:[#allocation21_spill]] }
 0xb02   : > { %s2725_s22 = sld [smem:[#allocation20_spill]] }
 0xb07   : > { %s1402_s4 = sand.u32 1, %s2723_s12   ;;  %p2726_p13 = scmp.ne.s32.totalorder %s2724_s24, 0 }
 0xb08   : > { %p2727_p7 = scmp.ge.s32.totalorder %s2725_s22, 2  ;;  %s1403_s20 = scalar_lea.sflag [#allocation4], %s1402_s4 }
 0xb0a   : > { %p1751_p3 = pnand %p2727_p7, %p2726_p13 }
 0xb0c   : > { %2061 = dma.done.wait (!%p1751_p3), %s1403_s20, 128  }
 0xb0d   : > { %2063 = vsyncadd (!%p1751_p3), %s1403_s20, 4294967168  ;;  %s2728_s20 = sld [smem:[#allocation22_spill]]  ;;  %s2729_s15 = sld [smem:[#allocation23_spill]] }
 0xb0e   : > { %s2730_s17 = smov %s2070_s18  ;;  %s2731_s18 = smov %s2074_s19 }
 0xb13   : > { %p29_p5 = scmp.ge.s32.totalorder %s2728_s20, 4   ;;  %s2732_s19 = smov %s2729_s15 }
 0xb15   :  { %31 = sbr.rel (!%p29_p5) target bundleno = 16 (0x10), region = 145 }
 0xb1c   :  { %1408 = vsyncpa [#allocation3], 1 }
 0xb1d   :  { %1410 = vsyncpa [#allocation3 + $0x1], 1 }
 0xb1e   :  { %1411 = vsyncpa [#allocation6], 1 }
 0xb1f   :  { %1413 = vsyncpa [#allocation6 + $0x1], 1 }
 0xb20   :  { %1414 = vsyncpa [#allocation9], 1 }
 0xb21   :  { %1415 = vsyncpa [#allocation12], 1 }
 0xb22   :  { %1416 = vsyncpa [#allocation4], 1 }
 0xb23   :  { %1418 = vsyncpa [#allocation4 + $0x1], 1 }

</bundles_post_ra>
